<compile_context>
chip_gen: v5e
topology: v5e:2x2
jax: 0.10.0
libtpu: 0.0.40
codegen_flags: <defaults>
</compile_context>

<pallas_src>
import jax
import jax.numpy as jnp
from jax import lax
from jax.experimental import pallas as pl
from jax.experimental.pallas import tpu as pltpu


def _simple_dis_kernel(x_ref, w_ref, s_ref, o_ref):
    # x_ref: (TB, N) batch tile in VMEM (lane-dense on N)
    # w_ref: (1, N)  raw (un-normalized) weight, resident (same block every step)
    # s_ref: (2,)    SMEM scalars: [1/sigma, bias]
    # o_ref: (1, TB) lane-dense output tile (batch rows on the lane axis)
    x = x_ref[...]
    w = w_ref[...].astype(x.dtype)
    # (1, N) . (TB, N) contracting on N -> (1, TB): MXU matvec, lane-dense result
    # (same q @ k.T contraction pattern as flash attention, no explicit transpose).
    y = lax.dot_general(w, x, (((1,), (1,)), ((), ())),
                        preferred_element_type=jnp.float32)
    y = y * s_ref[0] + s_ref[1]
    o_ref[...] = jnp.clip(y, -1.0, 1.0).astype(o_ref.dtype)


def _select_tile(B, N):
    """Pick the batch tile (rows per grid step) and the grid length."""
    if B < 256:
        # Tiny batch: one full-extent block; launch overhead dominates anyway.
        return B, 1
    lane_n = pl.cdiv(N, 128) * 128          # lane-padded row width
    row_bytes = lane_n * 4                  # f32 row of the x tile
    budget = 12 << 20                       # ~12 MiB for the double-buffered x tile
    tb = budget // (2 * row_bytes)
    tb = min(tb, 1024)                      # diminishing returns past ~1024 rows
    tb = min(tb, pl.cdiv(B, 2))             # force >= 2 grid steps (v7x megacore)
    tb = max(128, (tb // 128) * 128)        # keep the lane-dense out block 128-aligned
    return tb, pl.cdiv(B, tb)


def simple_dis_forward(x, weight, bias):
    """x: (B, num_latent); weight: (1, num_latent); bias: (1,).

    Returns clamp(x @ (weight / ||weight||_2).T + bias, -1, 1), shape (B, 1).
    """
    B, N = x.shape
    assert weight.shape == (1, N)
    assert bias.shape == (1,)

    # Spectral norm of a (1, N) weight == its L2 norm.  Hoist 1/sigma out of the
    # per-step kernel body; eps guards the all-zero-weight case (torch uses 1e-12).
    w32 = weight.astype(jnp.float32)
    inv_sigma = lax.rsqrt(jnp.maximum(jnp.sum(w32 * w32), jnp.float32(1e-24)))
    scalars = jnp.stack([inv_sigma, bias[0].astype(jnp.float32)])  # (2,) -> SMEM

    tb, steps = _select_tile(B, N)
    padded_b = tb * steps  # >= B; the ragged tail is sliced off below

    out = pl.pallas_call(
        _simple_dis_kernel,
        out_shape=jax.ShapeDtypeStruct((1, padded_b), x.dtype),
        grid_spec=pltpu.PrefetchScalarGridSpec(
            num_scalar_prefetch=0,
            grid=(steps,),
            in_specs=[
                pl.BlockSpec((tb, N), lambda i: (i, 0)),   # x: batch-tiled, lane-dense
                pl.BlockSpec((1, N), lambda i: (0, 0)),    # weight: resident
                pl.BlockSpec(memory_space=pltpu.SMEM),     # [1/sigma, bias] scalars
            ],
            out_specs=pl.BlockSpec((1, tb), lambda i: (0, i)),  # lane-dense output
        ),
        compiler_params=pltpu.CompilerParams(
            dimension_semantics=("parallel",),
            vmem_limit_bytes=32 << 20,
        ),
    )(x, weight, scalars)

    # Row order: grid step i writes lanes [i*tb, (i+1)*tb) for global rows i*tb+j,
    # so a flat slice preserves batch order; padded lanes (>= B) are dropped.
    return out[0, :B].reshape(B, 1)


if __name__ == "__main__":
    key = jax.random.PRNGKey(0)
    k_x, k_w, k_b, k_x2 = jax.random.split(key, 4)

    def reference(x, weight, bias):
        # Plain-JAX reference matching the PyTorch module (full-f32 VPU path).
        w_sn = weight / jnp.sqrt(jnp.sum(weight * weight))
        return jnp.clip(jnp.sum(x * w_sn, axis=-1, keepdims=True) + bias, -1.0, 1.0)

    B, num_latent = 2, 32  # batch=2, hidden=32 (args.num_latent)
    x = jax.random.normal(k_x, (B, num_latent), dtype=jnp.float32)
    weight = jax.random.normal(k_w, (1, num_latent), dtype=jnp.float32)
    bias = jax.random.normal(k_b, (1,), dtype=jnp.float32) * 0.1

    out = jax.block_until_ready(simple_dis_forward(x, weight, bias))
    ref = reference(x, weight, bias)
    assert out.shape == (B, 1)
    assert jnp.allclose(out, ref, atol=1e-4), "mismatch vs reference (small batch)"

    # Also exercise the tiled, lane-dense, ragged-last-block path.
    B2 = 300
    x2 = jax.random.normal(k_x2, (B2, num_latent), dtype=jnp.float32)
    out2 = jax.block_until_ready(simple_dis_forward(x2, weight, bias))
    ref2 = reference(x2, weight, bias)
    assert out2.shape == (B2, 1)
    assert jnp.allclose(out2, ref2, atol=1e-4), "mismatch vs reference (tiled batch)"

    print("KERNEL_OK")
</pallas_src>

<mosaic_0001>
module attributes {stable_mosaic.version = 11 : i64} {
  func.func @_simple_dis_kernel(%arg0: i32, %arg1: memref<2x32xf32, #tpu.memory_space<vmem>>, %arg2: memref<1x32xf32, #tpu.memory_space<vmem>>, %arg3: memref<2xf32, #tpu.memory_space<smem>>, %arg4: memref<1x2xf32, #tpu.memory_space<vmem>>) attributes {dimension_semantics = [#tpu.dimension_semantics<parallel>], iteration_bounds = array<i64: 1>, scalar_prefetch = 0 : i64, scratch_operands = 0 : i64, tpu.core_type = #tpu.core_type<tc>, window_params = [{transform_indices = @transform_0, window_bounds = array<i64: 2, 32>}, {pipeline_mode = #tpu.pipeline_mode<synchronous>, transform_indices = @transform_1, window_bounds = array<i64: 1, 32>}, {transform_indices = @transform_2, window_bounds = array<i64: 2>}, {transform_indices = @transform_3, window_bounds = array<i64: 1, 2>}]} {
    %c0 = arith.constant 0 : index
    %c0_0 = arith.constant 0 : index
    %0 = vector.load %arg1[%c0, %c0_0] : memref<2x32xf32, #tpu.memory_space<vmem>>, vector<2x32xf32>
    %c0_1 = arith.constant 0 : index
    %c0_2 = arith.constant 0 : index
    %1 = vector.load %arg2[%c0_1, %c0_2] : memref<1x32xf32, #tpu.memory_space<vmem>>, vector<1x32xf32>
    %cst = arith.constant dense<0.000000e+00> : vector<1x2xf32>
    %2 = tpu.matmul %1, %0, %cst {dimension_numbers = #tpu.dot_dimension_numbers<[1], [1], [0], [0], [0, 0, 1, 0], [], []>} : vector<1x32xf32>, vector<2x32xf32>, vector<1x2xf32> -> vector<1x2xf32>
    %c0_3 = arith.constant 0 : index
    %3 = memref.load %arg3[%c0_3] : memref<2xf32, #tpu.memory_space<smem>>
    %4 = vector.broadcast %3 : f32 to vector<1x2xf32>
    %5 = arith.mulf %2, %4 : vector<1x2xf32>
    %c1 = arith.constant 1 : index
    %6 = memref.load %arg3[%c1] : memref<2xf32, #tpu.memory_space<smem>>
    %7 = vector.broadcast %6 : f32 to vector<1x2xf32>
    %8 = arith.addf %5, %7 : vector<1x2xf32>
    %cst_4 = arith.constant -1.000000e+00 : f32
    %cst_5 = arith.constant 1.000000e+00 : f32
    %9 = vector.broadcast %cst_4 : f32 to vector<1x2xf32>
    %10 = arith.maximumf %9, %8 : vector<1x2xf32>
    %11 = vector.broadcast %cst_5 : f32 to vector<1x2xf32>
    %12 = arith.minimumf %11, %10 : vector<1x2xf32>
    %c0_6 = arith.constant 0 : index
    %c0_7 = arith.constant 0 : index
    %13 = vector.load %arg4[%c0_6, %c0_7] : memref<1x2xf32, #tpu.memory_space<vmem>>, vector<1x2xf32>
    tpu.vector_store %arg4[%c0_6, %c0_7], %12 {strides = array<i32>} : memref<1x2xf32, #tpu.memory_space<vmem>>, vector<1x2xf32>,
    return
  }
  func.func @transform_0(%arg0: i32) -> (i32, i32) {
    %c0_i32 = arith.constant 0 : i32
    %c0_i32_0 = arith.constant 0 : i32
    return %arg0, %c0_i32 : i32, i32
  }
  func.func @transform_1(%arg0: i32) -> (i32, i32) {
    %c0_i32 = arith.constant 0 : i32
    %c0_i32_0 = arith.constant 0 : i32
    %c0_i32_1 = arith.constant 0 : i32
    return %c0_i32, %c0_i32_0 : i32, i32
  }
  func.func @transform_2(%arg0: i32) -> i32 {
    %c0_i32 = arith.constant 0 : i32
    %c0_i32_0 = arith.constant 0 : i32
    return %c0_i32 : i32
  }
  func.func @transform_3(%arg0: i32) -> (i32, i32) {
    %c0_i32 = arith.constant 0 : i32
    %c0_i32_0 = arith.constant 0 : i32
    return %c0_i32, %arg0 : i32, i32
  }
}

</mosaic_0001>

<bundles_post_ra>
// kernel: tpu_custom_call.1
= control target key start
LH: loop header
LB: loop body
LE: loop exit
PB: predicated region body
PF: predicated region fallthrough
CT: control target
= control target key end

     0   :  { %8 = vsyncpa [#allocation3], 0  ;;  %s250_s0 = inlined_call_operand.hbm [shape: f32[2,32], index: 0, kind: input, shape index: {}]   ;;  %s251_s1 = inlined_call_operand.hbm [shape: f32[1,32], index: 1, kind: input, shape index: {}]   ;;  %s252_s2 = inlined_call_operand.vmem [shape: f32[2], index: 2, kind: input, shape index: {}]   ;;  %s253_s3 = inlined_call_operand.hbm [shape: f32[1,2], index: 3, kind: output, shape index: {}]  }
   0x1   :  { %9 = vsyncpa [#allocation7], 0 }
   0x2   :  { %10 = vsyncpa [#allocation5], 0 }
   0x3   :  { %11 = vsyncpa [#allocation4], 0  ;;  %s17_s14 = sshll.u32 %s250_s0, 4  ;;  %s214_s15 = smov [#allocation2]   ;;  %s18_s14 = int_to_ptr.hbm [resolvable:$true] %s17_s14 }
   0x4   :  { %s19_s16 = sshll.u32 %s214_s15, 4  ;;  %s28_s19 = sshll.u32 %s251_s1, 4  ;;  %s20_s16 = int_to_ptr.vmem [resolvable:$true] %s19_s16  ;;  %s29_s19 = int_to_ptr.hbm [resolvable:$true] %s28_s19 }
   0x5   :  { %22 = dma.hbm_to_vmem [thread:$0]  %s18_s14, 32, %s20_s16, [#allocation3]  }
   0x6   :  { %s215_s20 = smov [#allocation6]   ;;  %s39_s24 = sshll.u32 %s252_s2, 4  ;;  %s40_s24 = int_to_ptr.vmem [resolvable:$true] %s39_s24 }
   0x7   :  { %s30_s21 = sshll.u32 %s215_s20, 4  ;;  %s216_s0 = smov [#allocation8]   ;;  %s31_s21 = int_to_ptr.vmem [resolvable:$true] %s30_s21 }
   0x8   :  { %33 = dma.hbm_to_vmem [thread:$0]  %s29_s19, 16, %s31_s21, [#allocation7]  }
   0x9   :  { %42 = dma.vmem_to_smem %s40_s24, 16, %s216_s0, [#allocation5]  }
   0xa   :  { %206 = dma.done.wait [#allocation3], 32  }
   0xb   :  { %207 = vsyncadd [#allocation3], 4294967264 }
   0xc   :  { %208 = dma.done.wait [#allocation7], 16  }
   0xd   :  { %209 = vsyncadd [#allocation7], 4294967280 }
   0xe   :  { %210 = dma.done.wait [#allocation5], 16  }
   0xf   :  { %211 = vsyncadd [#allocation5], 4294967280 }
  0x10   :  { %55 = sfence }
  0x11   :  { %v56_v0 = vld [vmem:[#allocation2] sm:$0x3]  ;;  %vm58_vm0 = vcmask 261120   ;;  %v57_v1 = vld [vmem:[#allocation6] sm:$0x1]  ;;  %s85_s1 = sld [smem:[#allocation8]] }
  0x12   :  { %114 = vmatpush.xpose.msk.msra.mxu0 %vm58_vm0, %v56_v0  ;;  %s116_s25 = sld [smem:[#allocation8 + $0x1]]  ;;  %s217_s2 = smov [#allocation9]   ;;  %vm93_vm1 = vcmask 8192  }
  0x13   :  { %s100_s26 = sshll.u32 %s217_s2, 4  ;;  %s102_s29 = sshll.u32 %s253_s3, 4  ;;  %s101_s26 = int_to_ptr.vmem [resolvable:$true] %s100_s26  ;;  %s103_s29 = int_to_ptr.hbm [resolvable:$true] %s102_s29 }
  0x15   :  { %115 = vmatmul.msk.f32.vlgmr.msra.gmra.mxu0 %vm58_vm0, %v57_v1 }
  0x17   :  { %v86_v2 = vstv %s85_s1 }
  0x18   :  { %v89_v4 = vstv %s116_s25 }
  0x92   :  { %v82_v3 = vpop.f32.mrf.mxu0 }
  0x93   :  { %v87_v5 = vmul.f32 %v86_v2, %v82_v3 }
  0x95   :  { %v90_v6 = vadd.f32 %v89_v4, %v87_v5 }
  0x97   :  { %v117_v7 = vclamps-f32 %v90_v6, 1.0 }
  0x99   :  { %94 = vst.msk [vmem:[#allocation9] sm:$0x1] %vm93_vm1, %v117_v7 }
  0x9a   :  { %105 = dma.vmem_to_hbm [thread:$0]  %s101_s26, 16, %s103_s29, [#allocation4]  }
  0x9b   :  { %212 = dma.done.wait [#allocation4], 16  }
  0x9c   :  { %213 = vsyncadd [#allocation4], 4294967280 }
  0x9d   :  { %110 = vsyncpa [#allocation3], 1 }
  0x9e   :  { %111 = vsyncpa [#allocation7], 1 }
  0x9f   :  { %112 = vsyncpa [#allocation4], 1 }
  0xa0   :  { %113 = vsyncpa [#allocation5], 1 }

</bundles_post_ra>
